<compile_context>
chip_gen: v7x
topology: tpu7x:2x2x1
jax: 0.10.0
libtpu: 0.0.40
codegen_flags: <defaults>
</compile_context>

<pallas_src>
import functools

import numpy as np

import jax
import jax.numpy as jnp
from jax import lax
from jax.experimental import pallas as pl
from jax.experimental.pallas import tpu as pltpu


def _round_up(x, m):
    return ((x + m - 1) // m) * m


def _cdiv(a, b):
    return (a + b - 1) // b


def fair_lora_kernel(s_ref, x_ref, w_ref, a_ref, b_ref, bias_ref, o_ref,
                     acc_ref, xa_ref, *, tk):
    """Grid = (row tiles i, Dout tiles j, Din tiles k); k is the reduction axis.

    INVARIANT: xa_ref (x @ lora_A) is filled on the j == 0 pass and reused for
    every other Dout tile of the same row tile, so the j axis must execute
    sequentially per row tile (it is marked "arbitrary", never "parallel").
    """
    j = pl.program_id(1)
    k = pl.program_id(2)
    nk = pl.num_programs(2)

    @pl.when(k == 0)
    def _zero_acc():
        acc_ref[...] = jnp.zeros_like(acc_ref)

    @pl.when((j == 0) & (k == 0))
    def _zero_xa():
        xa_ref[...] = jnp.zeros_like(xa_ref)

    x = x_ref[...]

    # Frozen linear partial product: x_k @ W[j, k]^T.  W keeps its native
    # (Dout, Din) layout; contracting the last dims of both operands removes
    # any wrapper-side transpose of the frozen weight.
    acc_ref[...] += lax.dot_general(
        x, w_ref[...],
        dimension_numbers=(((1,), (1,)), ((), ())),
        preferred_element_type=jnp.float32)

    # LoRA A projection: computed only on the first Dout tile of each row tile
    # and cached; lora_A is fully resident in VMEM, so slice the Din chunk.
    @pl.when(j == 0)
    def _lora_a():
        k_off = pl.multiple_of(k * tk, tk)
        a_blk = a_ref[pl.ds(k_off, tk), :]
        xa_ref[...] += jnp.dot(x, a_blk, preferred_element_type=jnp.float32)

    @pl.when(k == nk - 1)
    def _finalize():
        # s already contains the alpha/rank scaling (folded in the wrapper).
        xa_s = (xa_ref[...] * s_ref[...]).astype(b_ref.dtype)
        dy = jnp.dot(xa_s, b_ref[...], preferred_element_type=jnp.float32)
        o_ref[...] = (acc_ref[...] + dy + bias_ref[...]).astype(o_ref.dtype)


def fair_lora_linear(x, attr, w, bias, lora_A, lora_S, lora_B, *,
                     alpha=0.4, tm=512, tn=512, tk=512,
                     compute_dtype=jnp.bfloat16, out_dtype=None,
                     buffer_count=None):
    """FairLoRALinear forward.

    x: (N, B, Din); attr: (num_attrs,) int; w: (Dout, Din) torch-style;
    bias: (Dout,); lora_A: (Din, rank); lora_S: (num_attrs, rank);
    lora_B: (rank, Dout).

    tm/tn/tk: row / output-column / reduction tile sizes (tn, tk multiples of
    128, tm a multiple of 16).  Defaults target v6e/v7x; on v5e prefer tn=256.
    compute_dtype: MXU operand dtype (default bf16; accumulation is always f32).
    out_dtype: output dtype (default x.dtype).
    buffer_count: optional pipeline depth (pl.Buffered) for the x / W streams.
    """
    N, Bb, Din = x.shape
    Dout = w.shape[0]
    rank = lora_A.shape[1]
    num_attrs = lora_S.shape[0]
    scaling = alpha / rank
    out_dtype = x.dtype if out_dtype is None else out_dtype
    cdt = x.dtype if compute_dtype is None else compute_dtype

    # ---- glue: soft one-hot -> per-row diag scale (the torch.no_grad block) ----
    lam = 0.7
    denom = max(num_attrs - 1, 1)  # guard num_attrs == 1 (torch would divide by zero)
    oh = jax.nn.one_hot(attr, num_attrs, dtype=jnp.float32)
    oh = oh * lam + (1.0 - oh) * (1.0 - lam) / denom
    s = (oh @ lora_S.astype(jnp.float32)) * scaling          # (num_attrs, rank), scaling folded
    # Block repetition across batch slices, like the torch repeat/flatten; this
    # assumes the batch is grouped attribute-block-major (attr0 rows first, ...).
    num_slices = Bb // s.shape[0]
    s_rep = jnp.repeat(s, num_slices, axis=0)                 # (Bb, rank)
    M = N * Bb
    # TODO(synk): s could stay at (Bb, rank) and be expanded in-kernel to avoid
    # this (M, rank) HBM materialization; traffic is only M*rank*4 B, kept simple.
    s_rows = jnp.broadcast_to(s_rep[None], (N, Bb, rank)).reshape(M, rank)

    # ---- tile sizes & zero padding (keeps everything MXU/lane aligned) ----
    tm_e = min(tm, _round_up(M, 16))
    # Only the row axis is 'parallel' (megacore): if one row tile would cover
    # all of M, halve it so a 2-TC chip (v7x) gets >= 2 tiles to shard.
    if M > 16 and M <= tm_e:
        tm_e = max(16, _round_up(_cdiv(M, 2), 16))
    tn_e = min(tn, _round_up(Dout, 128))
    tk_e = min(tk, _round_up(Din, 128))
    M_p = _round_up(M, tm_e)
    Dout_p = _round_up(_round_up(Dout, 128), tn_e)
    Din_p = _round_up(_round_up(Din, 128), tk_e)

    def pad2(a, r, c):
        pr, pc = r - a.shape[0], c - a.shape[1]
        if pr == 0 and pc == 0:
            return a
        return jnp.pad(a, ((0, pr), (0, pc)))

    x2d = pad2(x.reshape(M, Din), M_p, Din_p).astype(cdt)
    s_rows_p = pad2(s_rows, M_p, rank).astype(jnp.float32)
    # Frozen weight in native (Dout, Din) layout: no transpose.  Pad is a
    # no-op for aligned shapes; the cast is a no-op if the frozen weights are
    # already stored in the compute dtype (recommended for production).
    w_p = pad2(w, Dout_p, Din_p).astype(cdt)
    a_p = pad2(lora_A, Din_p, rank).astype(cdt)                # (Din_p, rank)
    b_p = pad2(lora_B, rank, Dout_p).astype(cdt)               # (rank, Dout_p)
    bias2d = pad2(bias.reshape(1, Dout).astype(jnp.float32), 1, Dout_p)

    num_i, num_j, num_k = M_p // tm_e, Dout_p // tn_e, Din_p // tk_e
    grid = (num_i, num_j, num_k)

    # ---- cost estimate (counts the re-streaming implied by the tiling) ----
    c_isz = np.dtype(cdt).itemsize
    o_isz = np.dtype(out_dtype).itemsize
    flops = (2 * M_p * Din_p * Dout_p            # x @ W^T
             + 2 * M_p * Din_p * rank            # x @ lora_A
             + 2 * M_p * rank * Dout_p)          # (xa * s) @ lora_B
    bytes_accessed = (
        M_p * Din_p * c_isz * num_j              # x, re-streamed once per Dout tile
        + Dout_p * Din_p * c_isz * num_i         # W, re-streamed once per row tile
        + Din_p * rank * c_isz                   # lora_A (resident, fetched once)
        + rank * Dout_p * c_isz * num_i          # lora_B, once per (i, j)
        + Dout_p * 4 * num_i                     # bias, once per (i, j)
        + M_p * rank * 4                         # per-row diag scale, once per i
        + M_p * Dout_p * o_isz)                  # output
    cost = pl.CostEstimate(flops=flops, transcendentals=0,
                           bytes_accessed=bytes_accessed)

    # ---- VMEM footprint -> scoped limit (with headroom) ----
    nbuf = 2 if buffer_count is None else max(int(buffer_count), 2)

    def _tile_bytes(r, c, isz, bufs=2):
        return bufs * _round_up(max(r, 1), 8) * _round_up(c, 128) * isz

    vmem_est = (_tile_bytes(tm_e, tk_e, c_isz, nbuf)          # x
                + _tile_bytes(tn_e, tk_e, c_isz, nbuf)        # W
                + _tile_bytes(Din_p, rank, c_isz)             # lora_A (resident)
                + _tile_bytes(rank, tn_e, c_isz)              # lora_B
                + _tile_bytes(1, tn_e, 4)                     # bias
                + _tile_bytes(tm_e, rank, 4)                  # s
                + _tile_bytes(tm_e, tn_e, o_isz)              # out
                + _tile_bytes(tm_e, tn_e, 4, 1)               # acc scratch
                + _tile_bytes(tm_e, rank, 4, 1))              # xa scratch
    vmem_limit = int(min(max(vmem_est + (8 << 20), 32 << 20), 100 << 20))

    pm = {} if buffer_count is None else dict(pipeline_mode=pl.Buffered(int(buffer_count)))
    x_spec = pl.BlockSpec((tm_e, tk_e), lambda i, j, k: (i, k), **pm)
    w_spec = pl.BlockSpec((tn_e, tk_e), lambda i, j, k: (j, k), **pm)

    kernel = functools.partial(fair_lora_kernel, tk=tk_e)

    out_p = pl.pallas_call(
        kernel,
        out_shape=jax.ShapeDtypeStruct((M_p, Dout_p), out_dtype),
        grid=grid,
        in_specs=[
            pl.BlockSpec((tm_e, rank), lambda i, j, k: (i, 0)),    # per-row diag scale s
            x_spec,                                                # x rows (streamed)
            w_spec,                                                # W (Dout, Din) tile (streamed)
            pl.BlockSpec((Din_p, rank), lambda i, j, k: (0, 0)),   # lora_A, fully resident
            pl.BlockSpec((rank, tn_e), lambda i, j, k: (0, j)),    # lora_B tile
            pl.BlockSpec((1, tn_e), lambda i, j, k: (0, j)),       # bias tile
        ],
        out_specs=pl.BlockSpec((tm_e, tn_e), lambda i, j, k: (i, j)),
        scratch_shapes=[
            pltpu.VMEM((tm_e, tn_e), jnp.float32),   # f32 accumulator for x @ W^T
            pltpu.VMEM((tm_e, rank), jnp.float32),   # x @ lora_A, reused across Dout tiles
        ],
        compiler_params=pltpu.CompilerParams(
            # M axis parallel (megacore / v7x 2-TC sharding); the Dout axis must
            # be serialized because the x@lora_A scratch is reused across j;
            # Din is the reduction.
            dimension_semantics=("parallel", "arbitrary", "arbitrary"),
            vmem_limit_bytes=vmem_limit),
        cost_estimate=cost,
    )(s_rows_p, x2d, w_p, a_p, b_p, bias2d)

    # TODO(synk): global_s branch (lora_S_global added to the diagonal) not enabled (default False).
    return out_p[:M, :Dout].reshape(N, Bb, Dout)


def fair_lora_linear_ref(x, attr, w, bias, lora_A, lora_S, lora_B, *, alpha=0.4):
    """Pure-JAX f32 reference mirroring the PyTorch forward."""
    rank = lora_A.shape[1]
    num_attrs = lora_S.shape[0]
    scaling = alpha / rank
    y = jnp.einsum("nbd,od->nbo", x, w) + bias
    lam = 0.7
    denom = max(num_attrs - 1, 1)
    oh = jax.nn.one_hot(attr, num_attrs, dtype=x.dtype)
    oh = oh * lam + (1.0 - oh) * (1.0 - lam) / denom
    s = oh @ lora_S
    num_slices = x.shape[1] // s.shape[0]
    s_rep = jnp.repeat(s, num_slices, axis=0)              # block repetition, as in torch
    xa = jnp.einsum("nbd,dr->nbr", x, lora_A)
    dy = xa * s_rep[None]                                   # einsum('nbr,brr->nbr') with diag S
    dy = jnp.einsum("nbr,ro->nbo", dy, lora_B) * scaling
    return y + dy


def _make_lora_S(rank, num_attrs, dtype=jnp.float32):
    # 'same+cycle' init from reset_parameters (rank even, rank >= num_attrs).
    half = rank // 2
    base = jnp.linspace(0.5, 0.1, half, dtype=dtype)
    step = half // num_attrs
    cyc = jnp.stack([jnp.roll(base, -i * step) for i in range(num_attrs)])
    return jnp.concatenate([jnp.tile(base[None], (num_attrs, 1)), cyc * 0.2], axis=1)


if __name__ == "__main__":
    key = jax.random.PRNGKey(0)

    def run_case(N, B, Din, Dout, rank, num_attrs, alpha, attr, *, tiles=None,
                 compute_dtype=jnp.bfloat16, atol=5e-2, rtol=5e-2):
        ks = jax.random.split(key, 5)
        x = jax.random.normal(ks[0], (N, B, Din), jnp.float32)
        w = jax.random.normal(ks[1], (Dout, Din), jnp.float32) * 0.05   # torch Linear weight (out, in)
        bias = jax.random.normal(ks[2], (Dout,), jnp.float32) * 0.1
        # NOTE: the module's reset_parameters() zeroes lora_A (so dy == 0 at init);
        # use a small non-zero init so the LoRA path is actually exercised.
        lora_A = jax.random.normal(ks[3], (Din, rank), jnp.float32) * 0.1
        lora_B = jax.random.normal(ks[4], (rank, Dout), jnp.float32)
        lora_S = _make_lora_S(rank, num_attrs)

        kwargs = dict(alpha=alpha, compute_dtype=compute_dtype)
        if tiles is not None:
            kwargs.update(tm=tiles[0], tn=tiles[1], tk=tiles[2])
        out = fair_lora_linear(x, attr, w, bias, lora_A, lora_S, lora_B, **kwargs)
        out = jax.block_until_ready(out)

        ref = fair_lora_linear_ref(x, attr, w, bias, lora_A, lora_S, lora_B, alpha=alpha)
        assert out.shape == (N, B, Dout)
        max_err = float(jnp.max(jnp.abs(out - ref)))
        assert jnp.allclose(out, ref, atol=atol, rtol=rtol), f"mismatch (max abs err {max_err})"
        return out

    attr2 = jnp.array([0, 1], dtype=jnp.int32)

    # 1) Small shapes from the module spec (seq=8, batch=2, hidden=32), f32 MXU path.
    run_case(8, 2, 32, 32, 4, 2, 0.4, attr2,
             compute_dtype=jnp.float32, atol=2e-3, rtol=2e-3)

    # 2) Multi-tile grid (M x Dout x Din), default bf16 MXU path: exercises K
    #    accumulation, Dout tiling, padding, resident lora_A, and reuse of the
    #    x@lora_A scratch across Dout tiles.
    run_case(48, 6, 160, 192, 8, 2, 0.4, attr2, tiles=(128, 128, 128))

    # 3) Same shapes on the f32 MXU path, tight tolerance.
    run_case(48, 6, 160, 192, 8, 2, 0.4, attr2, tiles=(128, 128, 128),
             compute_dtype=jnp.float32, atol=2e-3, rtol=2e-3)

    # 4) Default (large) tiles, bf16: exercises the megacore row-tile split
    #    (single row tile halved into two 'parallel' tiles).
    run_case(48, 6, 160, 192, 8, 2, 0.4, attr2)

    print("KERNEL_OK")
</pallas_src>

<mosaic_0001>
module attributes {stable_mosaic.version = 11 : i64} {
  func.func @fair_lora_kernel(%arg0: i32, %arg1: i32, %arg2: i32, %arg3: memref<16x4xf32, #tpu.memory_space<vmem>>, %arg4: memref<16x128xf32, #tpu.memory_space<vmem>>, %arg5: memref<128x128xf32, #tpu.memory_space<vmem>>, %arg6: memref<128x4xf32, #tpu.memory_space<vmem>>, %arg7: memref<4x128xf32, #tpu.memory_space<vmem>>, %arg8: memref<1x128xf32, #tpu.memory_space<vmem>>, %arg9: memref<16x128xf32, #tpu.memory_space<vmem>>, %arg10: memref<16x128xf32, #tpu.memory_space<vmem>>, %arg11: memref<16x4xf32, #tpu.memory_space<vmem>>) attributes {dimension_semantics = [#tpu.dimension_semantics<parallel>, #tpu.dimension_semantics<arbitrary>, #tpu.dimension_semantics<arbitrary>], iteration_bounds = array<i64: 1, 1, 1>, scalar_prefetch = 0 : i64, scratch_operands = 2 : i64, tpu.core_type = #tpu.core_type<tc>, window_params = [{transform_indices = @transform_0, window_bounds = array<i64: 16, 4>}, {transform_indices = @transform_1, window_bounds = array<i64: 16, 128>}, {transform_indices = @transform_2, window_bounds = array<i64: 128, 128>}, {pipeline_mode = #tpu.pipeline_mode<synchronous>, transform_indices = @transform_3, window_bounds = array<i64: 128, 4>}, {transform_indices = @transform_4, window_bounds = array<i64: 4, 128>}, {transform_indices = @transform_5, window_bounds = array<i64: 1, 128>}, {transform_indices = @transform_6, window_bounds = array<i64: 16, 128>}]} {
    %c0_i32 = arith.constant 0 : i32
    %0 = arith.cmpi eq, %arg2, %c0_i32 : i32
    %1 = arith.extui %0 : i1 to i32
    %c0_i32_0 = arith.constant 0 : i32
    %2 = arith.cmpi ne, %1, %c0_i32_0 : i32
    scf.if %2 {
      %cst_15 = arith.constant 0.000000e+00 : f32
      %20 = vector.broadcast %cst_15 : f32 to vector<16x128xf32>
      %c0_16 = arith.constant 0 : index
      %c0_17 = arith.constant 0 : index
      %21 = vector.load %arg10[%c0_16, %c0_17] : memref<16x128xf32, #tpu.memory_space<vmem>>, vector<16x128xf32>
      tpu.vector_store %arg10[%c0_16, %c0_17], %20 {strides = array<i32>} : memref<16x128xf32, #tpu.memory_space<vmem>>, vector<16x128xf32>,
    } else {
    }
    %c0_i32_1 = arith.constant 0 : i32
    %3 = arith.cmpi eq, %arg1, %c0_i32_1 : i32
    %c0_i32_2 = arith.constant 0 : i32
    %4 = arith.cmpi eq, %arg2, %c0_i32_2 : i32
    %5 = arith.andi %3, %4 : i1
    %6 = arith.extui %5 : i1 to i32
    %c0_i32_3 = arith.constant 0 : i32
    %7 = arith.cmpi ne, %6, %c0_i32_3 : i32
    scf.if %7 {
      %cst_15 = arith.constant 0.000000e+00 : f32
      %20 = vector.broadcast %cst_15 : f32 to vector<16x4xf32>
      %c0_16 = arith.constant 0 : index
      %c0_17 = arith.constant 0 : index
      %21 = vector.load %arg11[%c0_16, %c0_17] : memref<16x4xf32, #tpu.memory_space<vmem>>, vector<16x4xf32>
      tpu.vector_store %arg11[%c0_16, %c0_17], %20 {strides = array<i32>} : memref<16x4xf32, #tpu.memory_space<vmem>>, vector<16x4xf32>,
    } else {
    }
    %c0 = arith.constant 0 : index
    %c0_4 = arith.constant 0 : index
    %8 = vector.load %arg4[%c0, %c0_4] : memref<16x128xf32, #tpu.memory_space<vmem>>, vector<16x128xf32>
    %c0_5 = arith.constant 0 : index
    %c0_6 = arith.constant 0 : index
    %9 = vector.load %arg10[%c0_5, %c0_6] : memref<16x128xf32, #tpu.memory_space<vmem>>, vector<16x128xf32>
    %c0_7 = arith.constant 0 : index
    %c0_8 = arith.constant 0 : index
    %10 = vector.load %arg5[%c0_7, %c0_8] : memref<128x128xf32, #tpu.memory_space<vmem>>, vector<128x128xf32>
    %cst = arith.constant dense<0.000000e+00> : vector<16x128xf32>
    %11 = tpu.matmul %8, %10, %cst {dimension_numbers = #tpu.dot_dimension_numbers<[1], [1], [0], [0], [0, 0, 1, 0], [], []>} : vector<16x128xf32>, vector<128x128xf32>, vector<16x128xf32> -> vector<16x128xf32>
    %12 = arith.addf %9, %11 : vector<16x128xf32>
    %c0_9 = arith.constant 0 : index
    %c0_10 = arith.constant 0 : index
    %13 = vector.load %arg10[%c0_9, %c0_10] : memref<16x128xf32, #tpu.memory_space<vmem>>, vector<16x128xf32>
    tpu.vector_store %arg10[%c0_9, %c0_10], %12 {strides = array<i32>} : memref<16x128xf32, #tpu.memory_space<vmem>>, vector<16x128xf32>,
    %c0_i32_11 = arith.constant 0 : i32
    %14 = arith.cmpi eq, %arg1, %c0_i32_11 : i32
    %15 = arith.extui %14 : i1 to i32
    %c0_i32_12 = arith.constant 0 : i32
    %16 = arith.cmpi ne, %15, %c0_i32_12 : i32
    scf.if %16 {
      %c128_i32 = arith.constant 128 : i32
      %20 = arith.muli %arg2, %c128_i32 : i32
      %21 = tpu.assume_multiple %20, 128 : i32
      %22 = arith.index_cast %21 : i32 to index
      %c0_15 = arith.constant 0 : index
      %23 = vector.load %arg6[%22, %c0_15] : memref<128x4xf32, #tpu.memory_space<vmem>>, vector<128x4xf32>
      %c0_16 = arith.constant 0 : index
      %c0_17 = arith.constant 0 : index
      %24 = vector.load %arg11[%c0_16, %c0_17] : memref<16x4xf32, #tpu.memory_space<vmem>>, vector<16x4xf32>
      %cst_18 = arith.constant dense<0.000000e+00> : vector<16x4xf32>
      %25 = tpu.matmul %8, %23, %cst_18 {dimension_numbers = #tpu.dot_dimension_numbers<[1], [0], [0], [1], [0, 0, 1, 1], [], []>} : vector<16x128xf32>, vector<128x4xf32>, vector<16x4xf32> -> vector<16x4xf32>
      %26 = arith.addf %24, %25 : vector<16x4xf32>
      %c0_19 = arith.constant 0 : index
      %c0_20 = arith.constant 0 : index
      %27 = vector.load %arg11[%c0_19, %c0_20] : memref<16x4xf32, #tpu.memory_space<vmem>>, vector<16x4xf32>
      tpu.vector_store %arg11[%c0_19, %c0_20], %26 {strides = array<i32>} : memref<16x4xf32, #tpu.memory_space<vmem>>, vector<16x4xf32>,
    } else {
    }
    %c0_i32_13 = arith.constant 0 : i32
    %17 = arith.cmpi eq, %arg2, %c0_i32_13 : i32
    %18 = arith.extui %17 : i1 to i32
    %c0_i32_14 = arith.constant 0 : i32
    %19 = arith.cmpi ne, %18, %c0_i32_14 : i32
    scf.if %19 {
      %c0_15 = arith.constant 0 : index
      %c0_16 = arith.constant 0 : index
      %20 = vector.load %arg11[%c0_15, %c0_16] : memref<16x4xf32, #tpu.memory_space<vmem>>, vector<16x4xf32>
      %c0_17 = arith.constant 0 : index
      %c0_18 = arith.constant 0 : index
      %21 = vector.load %arg3[%c0_17, %c0_18] : memref<16x4xf32, #tpu.memory_space<vmem>>, vector<16x4xf32>
      %22 = arith.mulf %20, %21 : vector<16x4xf32>
      %c0_19 = arith.constant 0 : index
      %c0_20 = arith.constant 0 : index
      %23 = vector.load %arg7[%c0_19, %c0_20] : memref<4x128xf32, #tpu.memory_space<vmem>>, vector<4x128xf32>
      %cst_21 = arith.constant dense<0.000000e+00> : vector<16x128xf32>
      %24 = tpu.matmul %22, %23, %cst_21 {dimension_numbers = #tpu.dot_dimension_numbers<[1], [0], [0], [1], [0, 0, 1, 1], [], []>} : vector<16x4xf32>, vector<4x128xf32>, vector<16x128xf32> -> vector<16x128xf32>
      %c0_22 = arith.constant 0 : index
      %c0_23 = arith.constant 0 : index
      %25 = vector.load %arg10[%c0_22, %c0_23] : memref<16x128xf32, #tpu.memory_space<vmem>>, vector<16x128xf32>
      %26 = arith.addf %25, %24 : vector<16x128xf32>
      %c0_24 = arith.constant 0 : index
      %c0_25 = arith.constant 0 : index
      %27 = vector.load %arg8[%c0_24, %c0_25] : memref<1x128xf32, #tpu.memory_space<vmem>>, vector<1x128xf32>
      %28 = vector.broadcast %27 : vector<1x128xf32> to vector<16x128xf32>
      %29 = arith.addf %26, %28 : vector<16x128xf32>
      %c0_26 = arith.constant 0 : index
      %c0_27 = arith.constant 0 : index
      %30 = vector.load %arg9[%c0_26, %c0_27] : memref<16x128xf32, #tpu.memory_space<vmem>>, vector<16x128xf32>
      tpu.vector_store %arg9[%c0_26, %c0_27], %29 {strides = array<i32>} : memref<16x128xf32, #tpu.memory_space<vmem>>, vector<16x128xf32>,
    } else {
    }
    return
  }
  func.func @transform_0(%arg0: i32, %arg1: i32, %arg2: i32) -> (i32, i32) {
    %c0_i32 = arith.constant 0 : i32
    %c0_i32_0 = arith.constant 0 : i32
    return %arg0, %c0_i32 : i32, i32
  }
  func.func @transform_1(%arg0: i32, %arg1: i32, %arg2: i32) -> (i32, i32) {
    %c0_i32 = arith.constant 0 : i32
    return %arg0, %arg2 : i32, i32
  }
  func.func @transform_2(%arg0: i32, %arg1: i32, %arg2: i32) -> (i32, i32) {
    %c0_i32 = arith.constant 0 : i32
    return %arg1, %arg2 : i32, i32
  }
  func.func @transform_3(%arg0: i32, %arg1: i32, %arg2: i32) -> (i32, i32) {
    %c0_i32 = arith.constant 0 : i32
    %c0_i32_0 = arith.constant 0 : i32
    %c0_i32_1 = arith.constant 0 : i32
    return %c0_i32, %c0_i32_0 : i32, i32
  }
  func.func @transform_4(%arg0: i32, %arg1: i32, %arg2: i32) -> (i32, i32) {
    %c0_i32 = arith.constant 0 : i32
    %c0_i32_0 = arith.constant 0 : i32
    return %c0_i32, %arg1 : i32, i32
  }
  func.func @transform_5(%arg0: i32, %arg1: i32, %arg2: i32) -> (i32, i32) {
    %c0_i32 = arith.constant 0 : i32
    %c0_i32_0 = arith.constant 0 : i32
    return %c0_i32, %arg1 : i32, i32
  }
  func.func @transform_6(%arg0: i32, %arg1: i32, %arg2: i32) -> (i32, i32) {
    %c0_i32 = arith.constant 0 : i32
    return %arg0, %arg1 : i32, i32
  }
}

</mosaic_0001>

<bundles_post_ra>
// kernel: tpu_custom_call.1
= control target key start
LH: loop header
LB: loop body
LE: loop exit
PB: predicated region body
PF: predicated region fallthrough
CT: control target
= control target key end

     0   :  { %vm35_vm0 = vcmask 31744   ;;  %v579_v5 = vmov 0.0   ;;  %s750_s0 = inlined_call_operand.vmem [shape: f32[16,4], index: 0, kind: input, shape index: {}]   ;;  %s751_s1 = inlined_call_operand.vmem [shape: f32[16,128], index: 1, kind: input, shape index: {}]   ;;  %s752_s2 = inlined_call_operand.vmem [shape: f32[128,128], index: 2, kind: input, shape index: {}]   ;;  %s753_s3 = inlined_call_operand.vmem [shape: f32[128,4], index: 3, kind: input, shape index: {}]   ;;  %s754_s4 = inlined_call_operand.vmem [shape: f32[4,128], index: 4, kind: input, shape index: {}]   ;;  %s755_s5 = inlined_call_operand.vmem [shape: f32[1,128], index: 5, kind: input, shape index: {}]   ;;  %s756_s6 = inlined_call_operand.hbm [shape: f32[16,128], index: 6, kind: output, shape index: {}]  }
   0x1   :  { %v142_v0 = vld [vmem:[%s753_s3] sm:$0xff]  ;;  %v143_v1 = vld [vmem:[%s753_s3 + $0x8] sm:$0xff]  ;;  %v144_v2 = vld [vmem:[%s753_s3 + $0x10] sm:$0xff]  ;;  %37 = vst.msk [vmem:[#allocation3 + $0x8] sm:$0xff] %vm35_vm0, %v579_v5 }
   0x2   :  { %v517_v3 = vpack.c.bf16 %v143_v1, %v142_v0  ;;  %v145_v4 = vld [vmem:[%s753_s3 + $0x18] sm:$0xff]  ;;  %36 = vst.msk [vmem:[#allocation3] sm:$0xff] %vm35_vm0, %v579_v5  ;;  %v146_v7 = vld [vmem:[%s753_s3 + $0x20] sm:$0xff]  ;;  %v147_v8 = vld [vmem:[%s753_s3 + $0x28] sm:$0xff] }
   0x3   :  { %v521_v6 = vpack.c.bf16 %v145_v4, %v144_v2  ;;  %v525_v9 = vpack.c.bf16 %v147_v8, %v146_v7  ;;  %v148_v10 = vld [vmem:[%s753_s3 + $0x30] sm:$0xff]  ;;  %v149_v11 = vld [vmem:[%s753_s3 + $0x38] sm:$0xff]  ;;  %v38_v12 = vld [vmem:[%s751_s1] sm:$0xff] }
   0x4   :  { %518 = vmatprep.subr.bf16.mxu1 %v517_v3  ;;  %477 = vmatprep.mubr.f32.mxu1 %v38_v12  ;;  %v42_v13 = vld [vmem:[%s752_s2] sm:$0xff]  ;;  %v43_v14 = vld [vmem:[%s752_s2 + $0x8] sm:$0xff]  ;;  %v44_v15 = vld [vmem:[%s752_s2 + $0x10] sm:$0xff]  ;;  %v529_v19 = vpack.c.bf16 %v149_v11, %v148_v10 }
   0x5   :  { %520 = vmatpush3.bf16.msra.mxu1 %v517_v3  ;;  %442 = vmatprep.mubr.f32.mxu0 %v38_v12  ;;  %v485_v16 = vpack.c.bf16 %v43_v14, %v42_v13  ;;  %v45_v17 = vld [vmem:[%s752_s2 + $0x18] sm:$0xff]  ;;  %v150_v20 = vld [vmem:[%s753_s3 + $0x40] sm:$0xff]  ;;  %v151_v21 = vld [vmem:[%s753_s3 + $0x48] sm:$0xff] }
   0x6   :  { %522 = vmatprep.subr.bf16.mxu1 %v521_v6  ;;  %v489_v18 = vpack.c.bf16 %v45_v17, %v44_v15 }
   0x7   :  { %486 = vmatprep.subr.bf16.mxu0 %v485_v16 }
   0x8   :  { %488 = vmatpush3.bf16.xpose.msra.mxu0 %v485_v16 }
   0x9   :  { %524 = vmatpush3.bf16.msra.mxu1 %v521_v6  ;;  %490 = vmatprep.subr.bf16.mxu0 %v489_v18 }
   0xa   :  { %526 = vmatprep.subr.bf16.mxu1 %v525_v9 }
   0xb   :  { %11 = vsyncpa [#allocation5], 0  ;;  %v46_v22 = vld [vmem:[%s752_s2 + $0x20] sm:$0xff]  ;;  %v47_v23 = vld [vmem:[%s752_s2 + $0x28] sm:$0xff]  ;;  %v533_v24 = vpack.c.bf16 %v151_v21, %v150_v20  ;;  %vm257_vm1 = vcmask 1043456   ;;  %s580_s21 = smov [#allocation4]  }
   0xc   :  { %v152_v25 = vld [vmem:[%s753_s3 + $0x50] sm:$0xff]  ;;  %v153_v26 = vld [vmem:[%s753_s3 + $0x58] sm:$0xff]  ;;  %v493_v27 = vpack.c.bf16 %v47_v23, %v46_v22  ;;  %v154_v29 = vld [vmem:[%s753_s3 + $0x60] sm:$0xff]  ;;  %s356_s22 = sshll.u32 %s580_s21, 4  ;;  %s357_s22 = int_to_ptr.vmem [resolvable:$true] %s356_s22 }
   0xd   :  { %528 = vmatpush3.bf16.msra.mxu1 %v525_v9  ;;  %v537_v28 = vpack.c.bf16 %v153_v26, %v152_v25  ;;  %v155_v30 = vld [vmem:[%s753_s3 + $0x68] sm:$0xff]  ;;  %v48_v31 = vld [vmem:[%s752_s2 + $0x30] sm:$0xff]  ;;  %v49_v32 = vld [vmem:[%s752_s2 + $0x38] sm:$0xff]  ;;  %p560_p1 = scmp.lt.s32.totalorder %s357_s22, %s357_s22 }
   0xe   :  { %530 = vmatprep.subr.bf16.mxu1 %v529_v19  ;;  %v541_v33 = vpack.c.bf16 %v155_v30, %v154_v29  ;;  %v156_v34 = vld [vmem:[%s753_s3 + $0x70] sm:$0xff]  ;;  %v157_v35 = vld [vmem:[%s753_s3 + $0x78] sm:$0xff]  ;;  %v497_v36 = vpack.c.bf16 %v49_v32, %v48_v31  ;;  %v50_v38 = vld [vmem:[%s752_s2 + $0x40] sm:$0xff] }
   0xf   :  { %v545_v37 = vpack.c.bf16 %v157_v35, %v156_v34  ;;  %v51_v39 = vld [vmem:[%s752_s2 + $0x48] sm:$0xff]  ;;  %v52_v42 = vld [vmem:[%s752_s2 + $0x50] sm:$0xff]  ;;  %v53_v43 = vld [vmem:[%s752_s2 + $0x58] sm:$0xff] }
  0x10   :  { %492 = vmatpush3.bf16.xpose.msra.mxu0 %v489_v18  ;;  %v501_v40 = vpack.c.bf16 %v51_v39, %v50_v38  ;;  %v39_v41 = vld [vmem:[%s751_s1 + $0x8] sm:$0xff]  ;;  %v505_v44 = vpack.c.bf16 %v53_v43, %v52_v42  ;;  %v54_v45 = vld [vmem:[%s752_s2 + $0x60] sm:$0xff]  ;;  %v56_v48 = vld [vmem:[%s752_s2 + $0x70] sm:$0xff] }
  0x11   :  { %532 = vmatpush3.bf16.msra.mxu1 %v529_v19  ;;  %494 = vmatprep.subr.bf16.mxu0 %v493_v27  ;;  %v55_v46 = vld [vmem:[%s752_s2 + $0x68] sm:$0xff]  ;;  %v57_v49 = vld [vmem:[%s752_s2 + $0x78] sm:$0xff]  ;;  %v249_v51 = vld [vmem:[%s754_s4] sm:$0xf] }
  0x12   :  { %534 = vmatprep.subr.bf16.mxu1 %v533_v24  ;;  %v509_v47 = vpack.c.bf16 %v55_v46, %v54_v45  ;;  %v513_v50 = vpack.c.bf16 %v57_v49, %v56_v48  ;;  %v159_v52 = vld [vmem:[#allocation3 + $0x8] sm:$0xff]  ;;  %v158_v53 = vld [vmem:[#allocation3] sm:$0xff]  ;;  %v245_v58 = vld [vmem:[%s750_s0] sm:$0xff] }
  0x13   :  { %v246_v60 = vld [vmem:[%s750_s0 + $0x8] sm:$0xff]  ;;  %v370_v3 = vld [vmem:[%s755_s5] ss:$0 sm:$0xff]  ;;  %s555_s0 = scalar_lea.vmem %s357_s22, 256 }
  0x14   :  { %p556_p0 = scmp.ne.s32.totalorder %s357_s22, %s555_s0  ;;  %p561_p2 = scmp.lt.s32.totalorder %s555_s0, %s555_s0 }
  0x15   :  { %536 = vmatpush3.bf16.msra.mxu1 %v533_v24 }
  0x16   :  { %538 = vmatprep.subr.bf16.mxu1 %v537_v28  ;;  %p562_p3 = por %p561_p2, %p560_p1 }
  0x18   :  { %496 = vmatpush3.bf16.xpose.msra.mxu0 %v493_v27  ;;  %p563_p4 = pnand %p562_p3, %p556_p0 }
  0x19   :  { %540 = vmatpush3.bf16.msra.mxu1 %v537_v28  ;;  %498 = vmatprep.subr.bf16.mxu0 %v497_v36 }
  0x1a   :  { %542 = vmatprep.subr.bf16.mxu1 %v541_v33 }
  0x1d   :  { %544 = vmatpush3.bf16.msra.mxu1 %v541_v33 }
  0x1e   :  { %546 = vmatprep.subr.bf16.mxu1 %v545_v37 }
  0x20   :  { %500 = vmatpush3.bf16.xpose.msra.mxu0 %v497_v36 }
  0x21   :  { %548 = vmatpush3.bf16.msra.mxu1 %v545_v37  ;;  %502 = vmatprep.subr.bf16.mxu0 %v501_v40 }
  0x22   :  { %480 = vmatprep.subr.msk.mxu1 %vm257_vm1, %v249_v51 }
  0x24   :  { %478 = vmatmul.mubr.f32.vlgmr.msra.gmra.mrb[0].mxu1 %v39_v41 }
  0x25   :  { %481 = vmatpush3.msk.msra.mxu1 %vm257_vm1, %v249_v51 }
  0x28   :  { %504 = vmatpush3.bf16.xpose.msra.mxu0 %v501_v40 }
  0x29   :  { %506 = vmatprep.subr.bf16.mxu0 %v505_v44 }
  0x30   :  { %508 = vmatpush3.bf16.xpose.msra.mxu0 %v505_v44 }
  0x31   :  { %510 = vmatprep.subr.bf16.mxu0 %v509_v47 }
  0x38   :  { %512 = vmatpush3.bf16.xpose.msra.mxu0 %v509_v47 }
  0x39   :  { %514 = vmatprep.subr.bf16.mxu0 %v513_v50 }
  0x40   :  { %516 = vmatpush3.bf16.xpose.msra.mxu0 %v513_v50 }
  0x47   :  { %443 = vmatmul.mubr.f32.vlgmr.msra.gmra.mrb[0].mxu0 %v39_v41 }
  0xf7   :  { %v479_v54 = vpop.f32.mrb[0].mxu1 }
  0xf8   :  { %v236_v55 = vadd.f32 %v479_v54, %v159_v52  ;;  %v226_v56 = vpop.f32.mrb[1].mxu1 }
  0xf9   :  { %v235_v57 = vadd.f32 %v226_v56, %v158_v53 }
  0xfa   :  { %239 = vst.msk [vmem:[#allocation3 + $0x8] sm:$0xff] %vm35_vm0, %v236_v55 }
  0xfb   :  { %238 = vst.msk [vmem:[#allocation3] sm:$0xff] %vm35_vm0, %v235_v57 }
 0x101   :  { %v244_v59 = vld [vmem:[#allocation3 + $0x8] sm:$0xff] }
 0x102   :  { %v243_v61 = vld [vmem:[#allocation3] sm:$0xff]  ;;  %v248_v63 = vmul.f32 %v246_v60, %v244_v59 }
 0x103   :  { %v247_v62 = vmul.f32 %v245_v58, %v243_v61 }
 0x105   :  { %482 = vmatprep.mubr.msk.f32.mxu1 %vm35_vm0, %v247_v62 }
 0x106   :  { %483 = vmatmul.mubr.msk.f32.vlgmr.msra.gmra.mrb[2].mxu1 %vm35_vm0, %v248_v63 }
 0x11a   :  { %v444_v0 = vpop.f32.mrb[0].mxu0 }
 0x11b   :  { %v124_v1 = vpop.f32.mrb[1].mxu0 }
 0x1d9   :  { %v484_v2 = vpop.f32.mrb[2].mxu1 }
 0x1da   :  { %v339_v4 = vadd.f32 %v484_v2, %v444_v0  ;;  %v327_v5 = vpop.f32.mrb[3].mxu1 }
 0x1db   :  { %v338_v6 = vadd.f32 %v327_v5, %v124_v1 }
 0x1dc   :  { %v348_v7 = vadd.f32 %v370_v3, %v339_v4 }
 0x1dd   :  { %v347_v8 = vadd.f32 %v370_v3, %v338_v6 }
 0x1de   :  { %350 = vst [vmem:[#allocation4 + $0x8] sm:$0xff] %v348_v7 }
 0x1df   :  { %349 = vst [vmem:[#allocation4] sm:$0xff] %v347_v8 }
 0x1e0   :  { %566 = shalt.err (!%p563_p4)
}
 0x1e1   :  { %s567_s5 = scalar_lea.hbm %s756_s6, 256 }
 0x1e2   :  { %p568_p5 = scmp.ne.s32.totalorder %s756_s6, %s567_s5  ;;  %p571_p6 = scmp.lt.u32.totalorder %s567_s5, %s756_s6 }
 0x1e4   :  { %p573_p7 = pnand %p571_p6, %p568_p5 }
 0x1e6   :  { %576 = shalt.err (!%p573_p7)
}
 0x1e7   :  { %s581_s28 = smov 128   ;;  %s582_s29 = smov 8  }
 0x1e8   :  { %362 = dma.vmem_to_hbm [thread:$0]  %s357_s22, 256, %s756_s6, [#allocation5], %s581_s28, %s581_s28, %s582_s29  }
 0x1e9   :  { %577 = dma.done.wait [#allocation5], 256  }
 0x1ea   :  { %578 = vsyncadd [#allocation5], 4294967040 }
 0x1eb   :  { %366 = vsyncpa [#allocation5], 1 }

</bundles_post_ra>
